<compile_context>
chip_gen: v7x
topology: tpu7x:2x2x1
jax: 0.10.0
libtpu: 0.0.40
codegen_flags: <defaults>
</compile_context>

<pallas_src>
import functools

import jax
import jax.numpy as jnp
from jax import lax
from jax.experimental import pallas as pl
from jax.experimental.pallas import tpu as pltpu


def _round_up(x, m):
    return ((x + m - 1) // m) * m


# ----------------------------------------------------------------------------
# Module-equivalent parameter construction
# ----------------------------------------------------------------------------
class VocabParam:
    """Mirror of the `vocab_param` object: attribute per vocab key -> base emb size."""

    def __init__(self, **kwargs):
        for k, v in kwargs.items():
            setattr(self, k, v)


def get_embedding_sizes(vocab_sizes: dict, vocab_param) -> list:
    return [getattr(vocab_param, k) for k in vocab_sizes.keys()]


def build_multi_embedding_params(vocab_sizes: dict, vocab_param, ratio, key):
    """Replicates MultiEmbeddingreduced.__init__: keep layers with int(size*ratio) != 0.

    Returns list of (vocab_size, emb_dim, weight[vocab_size, emb_dim]) for kept layers.
    nn.Embedding default init is N(0, 1); weights are round-tripped through bf16
    so the kernel's bf16 MXU path is bit-exact w.r.t. the f32 reference gather
    (the 0/1 one-hot is exact in bf16 by construction).
    """
    emb_sizes = get_embedding_sizes(vocab_sizes, vocab_param)
    params = []
    for vocab_size, emb_size in zip(vocab_sizes.values(), emb_sizes):
        d = int(emb_size * ratio)
        if d != 0:
            key, sub = jax.random.split(key)
            w = jax.random.normal(sub, (vocab_size, d), dtype=jnp.float32)
            w = w.astype(jnp.bfloat16).astype(jnp.float32)
            params.append((vocab_size, d, w))
    return params


# ----------------------------------------------------------------------------
# Pallas kernel
# ----------------------------------------------------------------------------
def _fused_embedding_kernel(idx_ref, tbl_ref, out_ref, *, n_feats, v_pad):
    """idx_ref: [TILE_N, F] int32 (per-feature vocab offsets already added).
    tbl_ref: [Vpad, Dpad] block-diagonal fused table (bf16, VMEM-resident).
    out_ref: [TILE_N, Dpad] float32.
    """
    tile_n = idx_ref.shape[0]
    iota = lax.broadcasted_iota(jnp.int32, (tile_n, v_pad), 1)

    # Build the multi-hot in f32 on the VPU (no bf16 VALU on v5e); exactly one
    # 1.0 per feature per row since the offset ranges are disjoint.
    onehot = jnp.zeros((tile_n, v_pad), jnp.float32)
    for f in range(n_feats):  # trace-time unroll; F is small and static
        onehot = onehot + (idx_ref[:, f:f + 1] == iota).astype(jnp.float32)

    # Single fused MXU matmul -> one wide lane-dense store.
    out_ref[...] = jnp.dot(onehot.astype(tbl_ref.dtype), tbl_ref[...],
                           preferred_element_type=jnp.float32)


def multi_embedding_reduced(x, params, *, tile_n=512, table_dtype=jnp.bfloat16):
    """x: integer array [..., F_total] (only the first len(params) features are used,
    matching `x[..., i] for i, module in enumerate(self.layers)`).
    params: list of (vocab_size, emb_dim, weight) for kept layers.
    Returns float32 array [..., sum(emb_dims)].
    """
    n_feats = len(params)
    assert n_feats > 0, "all embedding layers were dropped by the ratio"

    lead_shape = x.shape[:-1]
    n_rows = 1
    for s in lead_shape:
        n_rows *= s

    total_v = sum(v for (v, _, _) in params)
    total_d = sum(d for (_, d, _) in params)
    v_pad = _round_up(total_v, 8)      # sublane-aligned contraction dim
    d_pad = _round_up(total_d, 128)    # lane-dense output dim (unmasked vst)

    # Fused block-diagonal table + per-feature vocab offsets.
    # (For a real module, precompute this once at init rather than per call.)
    tbl = jnp.zeros((v_pad, d_pad), jnp.float32)
    offsets = []
    v_off, d_off = 0, 0
    for (v, d, w) in params:
        tbl = tbl.at[v_off:v_off + v, d_off:d_off + d].set(w)
        offsets.append(v_off)
        v_off += v
        d_off += d
    tbl = tbl.astype(table_dtype)

    idx = x[..., :n_feats].reshape(n_rows, n_feats).astype(jnp.int32)
    idx = idx + jnp.asarray(offsets, dtype=jnp.int32)[None, :]

    # Row tiling: sublane-multiple tile, clamp to the (padded) row count.
    tile_n = min(tile_n, _round_up(n_rows, 8))
    n_pad = _round_up(n_rows, tile_n)
    if n_pad != n_rows:
        idx = jnp.pad(idx, ((0, n_pad - n_rows), (0, 0)))  # pad rows sliced off below

    kernel = functools.partial(_fused_embedding_kernel,
                               n_feats=n_feats, v_pad=v_pad)

    out = pl.pallas_call(
        kernel,
        out_shape=jax.ShapeDtypeStruct((n_pad, d_pad), jnp.float32),
        grid=(n_pad // tile_n,),
        in_specs=[
            pl.BlockSpec((tile_n, n_feats), lambda i: (i, 0)),  # row-tiled indices
            pl.BlockSpec((v_pad, d_pad), lambda i: (0, 0)),     # resident fused table
        ],
        out_specs=pl.BlockSpec((tile_n, d_pad), lambda i: (i, 0)),
        compiler_params=pltpu.CompilerParams(
            dimension_semantics=("parallel",)),  # v7x: split rows across both TCs
    )(idx, tbl)

    return out[:n_rows, :total_d].reshape(*lead_shape, total_d)


# ----------------------------------------------------------------------------
# Reference (plain JAX) for sanity checking
# ----------------------------------------------------------------------------
def multi_embedding_reduced_ref(x, params):
    outs = []
    for i, (_, _, w) in enumerate(params):
        outs.append(jnp.take(w, x[..., i].astype(jnp.int32), axis=0))
    return jnp.concatenate(outs, axis=-1)


if __name__ == "__main__":
    key = jax.random.PRNGKey(0)

    # Module config: one feature ("d") gets int(1 * 0.5) == 0 -> dropped,
    # exercising the reduced-layer path.
    vocab_sizes = {"a": 11, "b": 7, "c": 19, "d": 5}
    vocab_param = VocabParam(a=8, b=16, c=12, d=1)
    ratio = 0.5

    key, pkey = jax.random.split(key)
    params = build_multi_embedding_params(vocab_sizes, vocab_param, ratio, pkey)
    # kept emb dims: a->4, b->8, c->6  => total 18

    # Input indices: [batch=2, seq=8, F_total=4]; column i must be valid for
    # kept layer i's vocab (only the first len(params) columns are used).
    batch, seq = 2, 8
    cols = []
    for i in range(len(vocab_sizes)):
        key, sub = jax.random.split(key)
        if i < len(params):
            v = params[i][0]
        else:
            v = list(vocab_sizes.values())[i]
        cols.append(jax.random.randint(sub, (batch, seq, 1), 0, v, dtype=jnp.int32))
    x = jnp.concatenate(cols, axis=-1)  # [2, 8, 4] int32

    out = multi_embedding_reduced(x, params)
    out = jax.block_until_ready(out)

    ref = multi_embedding_reduced_ref(x, params)
    assert out.shape == (batch, seq, sum(d for (_, d, _) in params)), out.shape
    assert jnp.allclose(out, ref, atol=1e-5, rtol=1e-5), "mismatch vs reference"

    print("KERNEL_OK")
</pallas_src>

<mosaic_0001>
module attributes {stable_mosaic.version = 11 : i64} {
  func.func @_fused_embedding_kernel(%arg0: i32, %arg1: memref<16x3xi32, #tpu.memory_space<vmem>>, %arg2: memref<40x128xbf16, #tpu.memory_space<vmem>>, %arg3: memref<16x128xf32, #tpu.memory_space<vmem>>) attributes {dimension_semantics = [#tpu.dimension_semantics<parallel>], iteration_bounds = array<i64: 1>, scalar_prefetch = 0 : i64, scratch_operands = 0 : i64, tpu.core_type = #tpu.core_type<tc>, window_params = [{transform_indices = @transform_0, window_bounds = array<i64: 16, 3>}, {pipeline_mode = #tpu.pipeline_mode<synchronous>, transform_indices = @transform_1, window_bounds = array<i64: 40, 128>}, {transform_indices = @transform_2, window_bounds = array<i64: 16, 128>}]} {
    %0 = tpu.iota {dimensions = array<i32: 1>} : vector<16x40xi32>
    %cst = arith.constant 0.000000e+00 : f32
    %1 = vector.broadcast %cst : f32 to vector<16x40xf32>
    %c0 = arith.constant 0 : index
    %c0_0 = arith.constant 0 : index
    %2 = vector.load %arg1[%c0, %c0_0] : memref<16x3xi32, #tpu.memory_space<vmem>>, vector<16x1xi32>
    %3 = vector.broadcast %2 : vector<16x1xi32> to vector<16x40xi32>
    %4 = arith.cmpi eq, %3, %0 : vector<16x40xi32>
    %5 = arith.extui %4 : vector<16x40xi1> to vector<16x40xi32>
    %6 = arith.sitofp %5 : vector<16x40xi32> to vector<16x40xf32>
    %7 = arith.addf %1, %6 : vector<16x40xf32>
    %c0_1 = arith.constant 0 : index
    %c1 = arith.constant 1 : index
    %8 = vector.load %arg1[%c0_1, %c1] : memref<16x3xi32, #tpu.memory_space<vmem>>, vector<16x1xi32>
    %9 = vector.broadcast %8 : vector<16x1xi32> to vector<16x40xi32>
    %10 = arith.cmpi eq, %9, %0 : vector<16x40xi32>
    %11 = arith.extui %10 : vector<16x40xi1> to vector<16x40xi32>
    %12 = arith.sitofp %11 : vector<16x40xi32> to vector<16x40xf32>
    %13 = arith.addf %7, %12 : vector<16x40xf32>
    %c0_2 = arith.constant 0 : index
    %c2 = arith.constant 2 : index
    %14 = vector.load %arg1[%c0_2, %c2] : memref<16x3xi32, #tpu.memory_space<vmem>>, vector<16x1xi32>
    %15 = vector.broadcast %14 : vector<16x1xi32> to vector<16x40xi32>
    %16 = arith.cmpi eq, %15, %0 : vector<16x40xi32>
    %17 = arith.extui %16 : vector<16x40xi1> to vector<16x40xi32>
    %18 = arith.sitofp %17 : vector<16x40xi32> to vector<16x40xf32>
    %19 = arith.addf %13, %18 : vector<16x40xf32>
    %20 = arith.truncf %19 : vector<16x40xf32> to vector<16x40xbf16>
    %c0_3 = arith.constant 0 : index
    %c0_4 = arith.constant 0 : index
    %21 = vector.load %arg2[%c0_3, %c0_4] : memref<40x128xbf16, #tpu.memory_space<vmem>>, vector<40x128xbf16>
    %cst_5 = arith.constant dense<0.000000e+00> : vector<16x128xf32>
    %22 = tpu.matmul %20, %21, %cst_5 {dimension_numbers = #tpu.dot_dimension_numbers<[1], [0], [0], [1], [0, 0, 1, 1], [], []>} : vector<16x40xbf16>, vector<40x128xbf16>, vector<16x128xf32> -> vector<16x128xf32>
    %c0_6 = arith.constant 0 : index
    %c0_7 = arith.constant 0 : index
    %23 = vector.load %arg3[%c0_6, %c0_7] : memref<16x128xf32, #tpu.memory_space<vmem>>, vector<16x128xf32>
    tpu.vector_store %arg3[%c0_6, %c0_7], %22 {strides = array<i32>} : memref<16x128xf32, #tpu.memory_space<vmem>>, vector<16x128xf32>,
    return
  }
  func.func @transform_0(%arg0: i32) -> (i32, i32) {
    %c0_i32 = arith.constant 0 : i32
    %c0_i32_0 = arith.constant 0 : i32
    return %arg0, %c0_i32 : i32, i32
  }
  func.func @transform_1(%arg0: i32) -> (i32, i32) {
    %c0_i32 = arith.constant 0 : i32
    %c0_i32_0 = arith.constant 0 : i32
    %c0_i32_1 = arith.constant 0 : i32
    return %c0_i32, %c0_i32_0 : i32, i32
  }
  func.func @transform_2(%arg0: i32) -> (i32, i32) {
    %c0_i32 = arith.constant 0 : i32
    %c0_i32_0 = arith.constant 0 : i32
    return %arg0, %c0_i32 : i32, i32
  }
}

</mosaic_0001>

<bundles_post_ra>
// kernel: tpu_custom_call.1
= control target key start
LH: loop header
LB: loop body
LE: loop exit
PB: predicated region body
PF: predicated region fallthrough
CT: control target
= control target key end

     0   :  { %v210_v1 = vmov 1   ;;  %v211_v2 = vmov 0   ;;  %s260_s0 = inlined_call_operand.vmem [shape: s32[16,3], index: 0, kind: input, shape index: {}]   ;;  %s261_s1 = inlined_call_operand.vmem [shape: bf16[40,128], index: 1, kind: input, shape index: {}]   ;;  %s262_s2 = inlined_call_operand.hbm [shape: f32[16,128], index: 2, kind: output, shape index: {}]  }
   0x1   :  { %v15_v0 = vld [vmem:[%s260_s0] sm:$0xff]  ;;  %180 = vset.pattern.permute.xlu1 %v210_v1  ;;  %179 = vset.pattern.permute.xlu0 %v211_v2 }
   0x2   :  { %32 = vperm.xlu1 %180, %v15_v0   ;;  %18 = vperm.xlu0 %179, %v15_v0  }
   0x3   :  { %7 = vsyncpa [#allocation3], 0  ;;  %v16_v3 = vld [vmem:[%s260_s0 + $0x8] sm:$0xff]  ;;  %v212_v4 = vmov 0.0   ;;  %v183_v5 = vld [vmem:[%s261_s1] sm:$0xff]   ;;  %v213_v7 = vmov 2   ;;  %v13_v10 = vlaneseq }
   0x4   :  { %161 = vmatprep.subr.bf16.mxu0 %v212_v4  ;;  %v184_v6 = vld [vmem:[%s261_s1 + $0x8] sm:$0xff]   ;;  %v185_v8 = vld [vmem:[%s261_s1 + $0x10] ss:$0 sps:$4 sm:$0xff]   ;;  %vm84_vm0 = vcmask 1043456   ;;  %vm214_vm1 = vmmov 0   ;;  %vm80_vm8 = vcmask 326656  }
   0x5   :  { %162 = vmatpush3.bf16.msra.mxu0 %v183_v5  ;;  %v86_v9 = vsel %vm84_vm0, %v185_v8, 0  ;;  %167 = vmatprep.mubr.msk.bf16.mxu0 %vm214_vm1, %v212_v4  ;;  %v14_v12 = vand.u32 127, %v13_v10  ;;  %s215_s1 = smov [#allocation2]  }
   0x6   :  { %35 = vperm.xlu1 %180, %v16_v3   ;;  %21 = vperm.xlu0 %179, %v16_v3   ;;  %s136_s18 = sshll.u32 %s215_s1, 4  ;;  %s137_s18 = int_to_ptr.vmem [resolvable:$true] %s136_s18 }
   0x7   :  { %163 = vmatprep.subr.bf16.mxu0 %v212_v4  ;;  %s186_s19 = scalar_lea.vmem %s137_s18, 256  ;;  %p191_p1 = scmp.lt.s32.totalorder %s137_s18, %s137_s18 }
   0x8   :  { %p187_p0 = scmp.ne.s32.totalorder %s137_s18, %s186_s19  ;;  %p192_p2 = scmp.lt.s32.totalorder %s186_s19, %s186_s19 }
   0x9   :  { %164 = vmatpush3.bf16.msra.mxu0 %v184_v6 }
   0xa   :  { %182 = vset.pattern.permute.xlu1 %v213_v7  ;;  %181 = vset.pattern.permute.xlu0 %v213_v7  ;;  %p193_p3 = por %p192_p2, %p191_p1 }
   0xb   :  { %49 = vperm.xlu1 %182, %v16_v3   ;;  %46 = vperm.xlu0 %181, %v15_v0  }
   0xc   :  { %165 = vmatprep.subr.bf16.mxu0 %v212_v4  ;;  %p194_p4 = pnand %p193_p3, %p187_p0 }
   0xd   :  { %166 = vmatpush3.bf16.msra.mxu0 %v86_v9 }
  0x81   :  { %v33_v11 = vpop.permute.xlu1 %32  ;;  %v19_v13 = vpop.permute.xlu0 %18 }
  0x82   :  { %vm37_vm2 = vcmp.eq.s32.totalorder %v33_v11, %v14_v12  ;;  %vm23_vm3 = vcmp.eq.s32.totalorder %v19_v13, %v14_v12 }
  0x83   :  { %v149_v16 = vsel %vm37_vm2, 1.0, %v212_v4  ;;  %v147_v17 = vsel %vm23_vm3, 1.0, %v212_v4 }
  0x84   :  { %v43_v22 = vadd.f32 %v149_v16, %v147_v17 }
  0x85   :  { %v36_v14 = vpop.permute.xlu1 %35  ;;  %v22_v15 = vpop.permute.xlu0 %21 }
  0x86   :  { %vm38_vm4 = vcmp.eq.s32.totalorder %v36_v14, %v14_v12  ;;  %vm24_vm5 = vcmp.eq.s32.totalorder %v22_v15, %v14_v12 }
  0x87   :  { %v150_v18 = vsel %vm38_vm4, 1.0, %v212_v4  ;;  %v148_v19 = vsel %vm24_vm5, 1.0, %v212_v4 }
  0x88   :  { %v44_v23 = vadd.f32 %v150_v18, %v148_v19 }
  0x8a   :  { %v50_v20 = vpop.permute.xlu1 %49  ;;  %v47_v21 = vpop.permute.xlu0 %46 }
  0x8b   :  { %vm52_vm6 = vcmp.eq.s32.totalorder %v50_v20, %v14_v12  ;;  %vm51_vm7 = vcmp.eq.s32.totalorder %v47_v21, %v14_v12 }
  0x8c   :  { %v152_v24 = vsel %vm52_vm6, 1.0, %v212_v4  ;;  %v151_v25 = vsel %vm51_vm7, 1.0, %v212_v4 }
  0x8d   :  { %v58_v26 = vadd.f32 %v152_v24, %v44_v23  ;;  %v57_v27 = vadd.f32 %v151_v25, %v43_v22 }
  0x8f   :  { %v59_v28 = vpack.c.bf16 %v58_v26, %v57_v27 }
  0x91   :  { %168 = vmatmul.mubr.msk.bf16.vlgmr.msra.gmra.mrb[0].mxu0 %vm80_vm8, %v59_v28 }
 0x164   :  { %v122_v29 = vpop.f32.mrb[0].mxu0 }
 0x165   :  { %129 = vst [vmem:[#allocation2] sm:$0xff] %v122_v29  ;;  %v169_v30 = vpop.f32.mrb[1].mxu0 }
 0x166   :  { %v125_v31 = vpop.f32.mrb[2].mxu0 }
 0x167   :  { %130 = vst [vmem:[#allocation2 + $0x8] sm:$0xff] %v125_v31  ;;  %v170_v32 = vpop.f32.mrb[3].mxu0 }
 0x168   :  { %197 = shalt.err (!%p194_p4)
}
 0x169   :  { %s198_s22 = scalar_lea.hbm %s262_s2, 256 }
 0x16a   :  { %p199_p5 = scmp.ne.s32.totalorder %s262_s2, %s198_s22  ;;  %p202_p6 = scmp.lt.u32.totalorder %s198_s22, %s262_s2 }
 0x16c   :  { %p204_p7 = pnand %p202_p6, %p199_p5 }
 0x16e   :  { %207 = shalt.err (!%p204_p7)
}
 0x16f   :  { %s216_s27 = smov 128   ;;  %s217_s28 = smov 8  }
 0x170   :  { %142 = dma.vmem_to_hbm [thread:$0]  %s137_s18, 256, %s262_s2, [#allocation3], %s216_s27, %s216_s27, %s217_s28  }
 0x171   :  { %208 = dma.done.wait [#allocation3], 256  }
 0x172   :  { %209 = vsyncadd [#allocation3], 4294967040 }
 0x173   :  { %146 = vsyncpa [#allocation3], 1 }

</bundles_post_ra>
